<compile_context>
chip_gen: v5e
topology: v5e:2x2
jax: 0.10.0
libtpu: 0.0.40
codegen_flags: <defaults>
</compile_context>

<pallas_src>
import numpy as np
import jax
import jax.numpy as jnp
from jax.experimental import pallas as pl
from jax.experimental.pallas import tpu as pltpu

INPUT_DIM = 181
HIDDEN1 = 128
HIDDEN2 = 64
NUM_CLASSES = 5
OUT_PAD = 128          # lane-dense padded logits width (>= NUM_CLASSES)
BN_EPS = 1e-5


def _emotion_cls_kernel(x_ref,            # (TB, S, INPUT_DIM)  input dtype (f32)
                        w1_ref, b1_ref,   # (INPUT_DIM, 128) folded, (1, 128) f32
                        w2_ref, b2_ref,   # (128, 64) folded,        (1, 64)  f32
                        w3_ref, b3_ref,   # (64, OUT_PAD) padded,    (1, OUT_PAD) f32
                        out_ref):         # (TB, OUT_PAD)
    tb, s, f = x_ref.shape
    cdt = w1_ref.dtype                    # compute dtype (f32 or bf16)

    # Per-tile cast (no wrapper-side HBM round trip).  NOTE: with S a multiple
    # of 8 the (tb, S) merge is sublane-compatible and layout-free.
    x = x_ref[...].reshape(tb * s, f).astype(cdt)

    # fc1 (+ folded BN1) + ReLU.  Dropout == identity in eval mode.
    h1 = jnp.dot(x, w1_ref[...], preferred_element_type=jnp.float32)
    h1 = jnp.maximum(h1 + b1_ref[...], 0.0).astype(cdt)   # bf16 storage in bf16 path

    # fc2 (+ folded BN2) + ReLU (keep f32 for the exact mean below)
    h2 = jnp.dot(h1, w2_ref[...], preferred_element_type=jnp.float32)
    h2 = jnp.maximum(h2 + b2_ref[...], 0.0)

    # mean over S hoisted in front of fc3 (exact by linearity of fc3)
    h2m = (h2.reshape(tb, s, HIDDEN2).sum(axis=1) * (1.0 / s)).astype(cdt)

    # fc3 on the S-reduced activations (zero-padded to OUT_PAD lanes ->
    # unmasked lane-dense store)
    out_ref[...] = (jnp.dot(h2m, w3_ref[...], preferred_element_type=jnp.float32)
                    + b3_ref[...]).astype(out_ref.dtype)


def _resident_spec(shape):
    """Weight spec: constant block index -> stays VMEM-resident across grid."""
    nd = len(shape)  # capture by value (avoid late-binding lambda bug)
    return pl.BlockSpec(shape, lambda i, _nd=nd: (0,) * _nd,
                        memory_space=pltpu.VMEM)


def _pick_block_b(B, S, rows_target=8192):
    """Batch tile: ~rows_target flattened rows/tile, multiple of 8 sublanes."""
    if B <= 8:
        return B
    tb = max(8, (rows_target // max(S, 1)) // 8 * 8)
    return min(tb, B)


def emotion_classifier_forward(x, params, *, compute_dtype=jnp.float32,
                               out_dtype=jnp.float32, block_b=None):
    """x: (B, S, INPUT_DIM) -> (B, NUM_CLASSES) (eval-mode forward)."""
    B, S, F = x.shape
    assert F == INPUT_DIM
    f32 = jnp.float32

    # ---- host-side: fold eval-mode BN (+ bias) into the fc weights ----------
    s1 = (params["g1"] * jax.lax.rsqrt(params["v1"] + BN_EPS)).astype(f32)
    w1f = (params["w1"].astype(f32) * s1).astype(compute_dtype)
    b1f = ((params["b1"] - params["m1"]) * s1 + params["beta1"]).astype(f32)

    s2 = (params["g2"] * jax.lax.rsqrt(params["v2"] + BN_EPS)).astype(f32)
    w2f = (params["w2"].astype(f32) * s2).astype(compute_dtype)
    b2f = ((params["b2"] - params["m2"]) * s2 + params["beta2"]).astype(f32)

    # fc3 zero-padded to OUT_PAD lanes (negligible cost, lane-dense output)
    w3p = jnp.zeros((HIDDEN2, OUT_PAD), compute_dtype)
    w3p = w3p.at[:, :NUM_CLASSES].set(params["w3"].astype(compute_dtype))
    b3p = jnp.zeros((1, OUT_PAD), f32).at[:, :NUM_CLASSES].set(params["b3"])

    # ---- grid over batch tiles (no wrapper pad: edge block is masked) -------
    tb = _pick_block_b(B, S) if block_b is None else block_b
    grid_b = pl.cdiv(B, tb)

    # advisory cost estimate (mean hoisted before fc3)
    flops = (2 * B * S * (INPUT_DIM * HIDDEN1 + HIDDEN1 * HIDDEN2)
             + 2 * B * HIDDEN2 * OUT_PAD)
    bytes_accessed = int(
        x.size * x.dtype.itemsize
        + B * OUT_PAD * np.dtype(out_dtype).itemsize
        + sum(int(a.size) * a.dtype.itemsize
              for a in (w1f, b1f, w2f, b2f, w3p, b3p)))

    out = pl.pallas_call(
        _emotion_cls_kernel,
        out_shape=jax.ShapeDtypeStruct((B, OUT_PAD), out_dtype),
        grid=(grid_b,),
        in_specs=[
            pl.BlockSpec((tb, S, F), lambda i: (i, 0, 0),
                         memory_space=pltpu.VMEM),
            _resident_spec(w1f.shape), _resident_spec(b1f.shape),
            _resident_spec(w2f.shape), _resident_spec(b2f.shape),
            _resident_spec(w3p.shape), _resident_spec(b3p.shape),
        ],
        out_specs=pl.BlockSpec((tb, OUT_PAD), lambda i: (i, 0),
                               memory_space=pltpu.VMEM),
        compiler_params=pltpu.CompilerParams(
            dimension_semantics=("parallel",),   # megacore / multi-TC split
            vmem_limit_bytes=48 << 20),          # safe within v7x 64 MiB/TC
        cost_estimate=pl.CostEstimate(flops=flops, transcendentals=0,
                                      bytes_accessed=bytes_accessed),
    )(x, w1f, b1f, w2f, b2f, w3p, b3p)

    return out[:, :NUM_CLASSES]


def init_params(key):
    """Deterministic params mirroring the nn.Module (weights stored (in, out))."""
    ks = jax.random.split(key, 6)

    def lin(kw, kb, fan_in, fan_out):
        bound = 1.0 / jnp.sqrt(float(fan_in))
        w = jax.random.uniform(kw, (fan_in, fan_out), jnp.float32, -bound, bound)
        b = jax.random.uniform(kb, (1, fan_out), jnp.float32, -bound, bound)
        return w, b

    w1, b1 = lin(ks[0], ks[1], INPUT_DIM, HIDDEN1)
    w2, b2 = lin(ks[2], ks[3], HIDDEN1, HIDDEN2)
    w3, b3 = lin(ks[4], ks[5], HIDDEN2, NUM_CLASSES)

    return dict(
        w1=w1, b1=b1,
        g1=jnp.ones((1, HIDDEN1), jnp.float32),
        beta1=jnp.zeros((1, HIDDEN1), jnp.float32),
        m1=jnp.zeros((1, HIDDEN1), jnp.float32),
        v1=jnp.ones((1, HIDDEN1), jnp.float32),
        w2=w2, b2=b2,
        g2=jnp.ones((1, HIDDEN2), jnp.float32),
        beta2=jnp.zeros((1, HIDDEN2), jnp.float32),
        m2=jnp.zeros((1, HIDDEN2), jnp.float32),
        v2=jnp.ones((1, HIDDEN2), jnp.float32),
        w3=w3, b3=b3,
    )


def _reference_forward(x, params):
    """Plain-JAX reference (same eval-mode semantics, unfolded params)."""
    B, S, F = x.shape
    h = x.reshape(B * S, F)
    h = h @ params["w1"] + params["b1"]
    h = (h - params["m1"]) * jax.lax.rsqrt(params["v1"] + BN_EPS) * params["g1"] + params["beta1"]
    h = jnp.maximum(h, 0.0)
    h = h @ params["w2"] + params["b2"]
    h = (h - params["m2"]) * jax.lax.rsqrt(params["v2"] + BN_EPS) * params["g2"] + params["beta2"]
    h = jnp.maximum(h, 0.0)
    h = h @ params["w3"] + params["b3"]
    return h.reshape(B, S, NUM_CLASSES).mean(axis=1)


if __name__ == "__main__":
    key = jax.random.PRNGKey(0)
    kx, kp = jax.random.split(key)

    B, S = 2, 8
    x = jax.random.normal(kx, (B, S, INPUT_DIM), dtype=jnp.float32)
    params = init_params(kp)
    ref = _reference_forward(x, params)

    # f32 path: exact eval-mode semantics (mean hoist is exact by linearity)
    out_f32 = jax.block_until_ready(emotion_classifier_forward(x, params))
    assert out_f32.shape == (B, NUM_CLASSES)
    assert jnp.allclose(out_f32, ref, atol=1e-4, rtol=1e-4), (out_f32, ref)

    # bf16 compute path (per-tile in-kernel cast; f32 MXU accumulation)
    out_bf16 = jax.block_until_ready(
        emotion_classifier_forward(x, params, compute_dtype=jnp.bfloat16))
    assert jnp.allclose(out_bf16, ref, atol=5e-2, rtol=5e-2), (out_bf16, ref)

    # multi-tile path: B % tb != 0, no wrapper pad -> masked edge block
    B2 = 20
    x2 = jax.random.normal(jax.random.PRNGKey(1), (B2, S, INPUT_DIM),
                           dtype=jnp.float32)
    out_big = jax.block_until_ready(
        emotion_classifier_forward(x2, params, block_b=8))
    ref_big = _reference_forward(x2, params)
    assert out_big.shape == (B2, NUM_CLASSES)
    assert jnp.allclose(out_big, ref_big, atol=1e-4, rtol=1e-4), (out_big, ref_big)

    print("KERNEL_OK")
</pallas_src>

<mosaic_0001>
module attributes {stable_mosaic.version = 11 : i64} {
  func.func @_emotion_cls_kernel(%arg0: i32, %arg1: memref<2x8x181xf32, #tpu.memory_space<vmem>>, %arg2: memref<181x128xf32, #tpu.memory_space<vmem>>, %arg3: memref<1x128xf32, #tpu.memory_space<vmem>>, %arg4: memref<128x64xf32, #tpu.memory_space<vmem>>, %arg5: memref<1x64xf32, #tpu.memory_space<vmem>>, %arg6: memref<64x128xf32, #tpu.memory_space<vmem>>, %arg7: memref<1x128xf32, #tpu.memory_space<vmem>>, %arg8: memref<2x128xf32, #tpu.memory_space<vmem>>) attributes {dimension_semantics = [#tpu.dimension_semantics<parallel>], iteration_bounds = array<i64: 1>, scalar_prefetch = 0 : i64, scratch_operands = 0 : i64, tpu.core_type = #tpu.core_type<tc>, window_params = [{transform_indices = @transform_0, window_bounds = array<i64: 2, 8, 181>}, {pipeline_mode = #tpu.pipeline_mode<synchronous>, transform_indices = @transform_1, window_bounds = array<i64: 181, 128>}, {pipeline_mode = #tpu.pipeline_mode<synchronous>, transform_indices = @transform_2, window_bounds = array<i64: 1, 128>}, {pipeline_mode = #tpu.pipeline_mode<synchronous>, transform_indices = @transform_3, window_bounds = array<i64: 128, 64>}, {pipeline_mode = #tpu.pipeline_mode<synchronous>, transform_indices = @transform_4, window_bounds = array<i64: 1, 64>}, {pipeline_mode = #tpu.pipeline_mode<synchronous>, transform_indices = @transform_5, window_bounds = array<i64: 64, 128>}, {pipeline_mode = #tpu.pipeline_mode<synchronous>, transform_indices = @transform_6, window_bounds = array<i64: 1, 128>}, {transform_indices = @transform_7, window_bounds = array<i64: 2, 128>}]} {
    %c0 = arith.constant 0 : index
    %c0_0 = arith.constant 0 : index
    %c0_1 = arith.constant 0 : index
    %0 = vector.load %arg1[%c0, %c0_0, %c0_1] : memref<2x8x181xf32, #tpu.memory_space<vmem>>, vector<2x8x181xf32>
    %1 = vector.shape_cast %0 : vector<2x8x181xf32> to vector<16x181xf32>
    %c0_2 = arith.constant 0 : index
    %c0_3 = arith.constant 0 : index
    %2 = vector.load %arg2[%c0_2, %c0_3] : memref<181x128xf32, #tpu.memory_space<vmem>>, vector<181x128xf32>
    %cst = arith.constant dense<0.000000e+00> : vector<16x128xf32>
    %3 = tpu.matmul %1, %2, %cst {dimension_numbers = #tpu.dot_dimension_numbers<[1], [0], [0], [1], [0, 0, 1, 1], [], []>} : vector<16x181xf32>, vector<181x128xf32>, vector<16x128xf32> -> vector<16x128xf32>
    %c0_4 = arith.constant 0 : index
    %c0_5 = arith.constant 0 : index
    %4 = vector.load %arg3[%c0_4, %c0_5] : memref<1x128xf32, #tpu.memory_space<vmem>>, vector<1x128xf32>
    %5 = vector.broadcast %4 : vector<1x128xf32> to vector<16x128xf32>
    %6 = arith.addf %3, %5 : vector<16x128xf32>
    %cst_6 = arith.constant 0.000000e+00 : f32
    %7 = vector.broadcast %cst_6 : f32 to vector<16x128xf32>
    %8 = arith.maximumf %6, %7 : vector<16x128xf32>
    %c0_7 = arith.constant 0 : index
    %c0_8 = arith.constant 0 : index
    %9 = vector.load %arg4[%c0_7, %c0_8] : memref<128x64xf32, #tpu.memory_space<vmem>>, vector<128x64xf32>
    %cst_9 = arith.constant dense<0.000000e+00> : vector<16x64xf32>
    %10 = tpu.matmul %8, %9, %cst_9 {dimension_numbers = #tpu.dot_dimension_numbers<[1], [0], [0], [1], [0, 0, 1, 1], [], []>} : vector<16x128xf32>, vector<128x64xf32>, vector<16x64xf32> -> vector<16x64xf32>
    %c0_10 = arith.constant 0 : index
    %c0_11 = arith.constant 0 : index
    %11 = vector.load %arg5[%c0_10, %c0_11] : memref<1x64xf32, #tpu.memory_space<vmem>>, vector<1x64xf32>
    %12 = vector.broadcast %11 : vector<1x64xf32> to vector<16x64xf32>
    %13 = arith.addf %10, %12 : vector<16x64xf32>
    %cst_12 = arith.constant 0.000000e+00 : f32
    %14 = vector.broadcast %cst_12 : f32 to vector<16x64xf32>
    %15 = arith.maximumf %13, %14 : vector<16x64xf32>
    %16 = vector.shape_cast %15 : vector<16x64xf32> to vector<2x8x64xf32>
    %cst_13 = arith.constant dense<0.000000e+00> : vector<2x64xf32>
    %17 = vector.multi_reduction <add>, %16, %cst_13 [1] : vector<2x8x64xf32> to vector<2x64xf32>
    %cst_14 = arith.constant 1.250000e-01 : f32
    %18 = vector.broadcast %cst_14 : f32 to vector<2x64xf32>
    %19 = arith.mulf %17, %18 : vector<2x64xf32>
    %c0_15 = arith.constant 0 : index
    %c0_16 = arith.constant 0 : index
    %20 = vector.load %arg6[%c0_15, %c0_16] : memref<64x128xf32, #tpu.memory_space<vmem>>, vector<64x128xf32>
    %cst_17 = arith.constant dense<0.000000e+00> : vector<2x128xf32>
    %21 = tpu.matmul %19, %20, %cst_17 {dimension_numbers = #tpu.dot_dimension_numbers<[1], [0], [0], [1], [0, 0, 1, 1], [], []>} : vector<2x64xf32>, vector<64x128xf32>, vector<2x128xf32> -> vector<2x128xf32>
    %c0_18 = arith.constant 0 : index
    %c0_19 = arith.constant 0 : index
    %22 = vector.load %arg7[%c0_18, %c0_19] : memref<1x128xf32, #tpu.memory_space<vmem>>, vector<1x128xf32>
    %23 = vector.broadcast %22 : vector<1x128xf32> to vector<2x128xf32>
    %24 = arith.addf %21, %23 : vector<2x128xf32>
    %c0_20 = arith.constant 0 : index
    %c0_21 = arith.constant 0 : index
    %25 = vector.load %arg8[%c0_20, %c0_21] : memref<2x128xf32, #tpu.memory_space<vmem>>, vector<2x128xf32>
    tpu.vector_store %arg8[%c0_20, %c0_21], %24 {strides = array<i32>} : memref<2x128xf32, #tpu.memory_space<vmem>>, vector<2x128xf32>,
    return
  }
  func.func @transform_0(%arg0: i32) -> (i32, i32, i32) {
    %c0_i32 = arith.constant 0 : i32
    %c0_i32_0 = arith.constant 0 : i32
    %c0_i32_1 = arith.constant 0 : i32
    return %arg0, %c0_i32, %c0_i32_0 : i32, i32, i32
  }
  func.func @transform_1(%arg0: i32) -> (i32, i32) {
    %c0_i32 = arith.constant 0 : i32
    %c0_i32_0 = arith.constant 0 : i32
    %c0_i32_1 = arith.constant 0 : i32
    return %c0_i32, %c0_i32_0 : i32, i32
  }
  func.func @transform_2(%arg0: i32) -> (i32, i32) {
    %c0_i32 = arith.constant 0 : i32
    %c0_i32_0 = arith.constant 0 : i32
    %c0_i32_1 = arith.constant 0 : i32
    return %c0_i32, %c0_i32_0 : i32, i32
  }
  func.func @transform_3(%arg0: i32) -> (i32, i32) {
    %c0_i32 = arith.constant 0 : i32
    %c0_i32_0 = arith.constant 0 : i32
    %c0_i32_1 = arith.constant 0 : i32
    return %c0_i32, %c0_i32_0 : i32, i32
  }
  func.func @transform_4(%arg0: i32) -> (i32, i32) {
    %c0_i32 = arith.constant 0 : i32
    %c0_i32_0 = arith.constant 0 : i32
    %c0_i32_1 = arith.constant 0 : i32
    return %c0_i32, %c0_i32_0 : i32, i32
  }
  func.func @transform_5(%arg0: i32) -> (i32, i32) {
    %c0_i32 = arith.constant 0 : i32
    %c0_i32_0 = arith.constant 0 : i32
    %c0_i32_1 = arith.constant 0 : i32
    return %c0_i32, %c0_i32_0 : i32, i32
  }
  func.func @transform_6(%arg0: i32) -> (i32, i32) {
    %c0_i32 = arith.constant 0 : i32
    %c0_i32_0 = arith.constant 0 : i32
    %c0_i32_1 = arith.constant 0 : i32
    return %c0_i32, %c0_i32_0 : i32, i32
  }
  func.func @transform_7(%arg0: i32) -> (i32, i32) {
    %c0_i32 = arith.constant 0 : i32
    %c0_i32_0 = arith.constant 0 : i32
    return %arg0, %c0_i32 : i32, i32
  }
}

</mosaic_0001>

<bundles_post_ra>
// kernel: tpu_custom_call.1
= control target key start
LH: loop header
LB: loop body
LE: loop exit
PB: predicated region body
PF: predicated region fallthrough
CT: control target
= control target key end

     0   :  { %12 = vsyncpa [#allocation3], 0  ;;  %s547_s0 = inlined_call_operand.hbm [shape: f32[2,8,181], index: 0, kind: input, shape index: {}]   ;;  %s548_s1 = inlined_call_operand.vmem [shape: f32[181,128], index: 1, kind: input, shape index: {}]   ;;  %s549_s2 = inlined_call_operand.vmem [shape: f32[1,128], index: 2, kind: input, shape index: {}]   ;;  %s550_s3 = inlined_call_operand.vmem [shape: f32[128,64], index: 3, kind: input, shape index: {}]   ;;  %s551_s4 = inlined_call_operand.vmem [shape: f32[1,64], index: 4, kind: input, shape index: {}]   ;;  %s552_s5 = inlined_call_operand.hbm [shape: f32[64,128], index: 5, kind: input, shape index: {}]   ;;  %s553_s6 = inlined_call_operand.vmem [shape: f32[1,128], index: 6, kind: input, shape index: {}]   ;;  %s554_s7 = inlined_call_operand.hbm [shape: f32[2,128], index: 7, kind: output, shape index: {}]  }
   0x1   :  { %13 = vsyncpa [#allocation6], 0 }
   0x2   :  { %14 = vsyncpa [#allocation4], 0  ;;  %s19_s26 = sshll.u32 %s547_s0, 4  ;;  %s360_s27 = smov [#allocation2]   ;;  %s20_s26 = int_to_ptr.hbm [resolvable:$true] %s19_s26 }
   0x3   :  { %s21_s28 = sshll.u32 %s360_s27, 4  ;;  %s40_s8 = sshll.u32 %s552_s5, 4  ;;  %s22_s28 = int_to_ptr.vmem [resolvable:$true] %s21_s28  ;;  %s41_s8 = int_to_ptr.hbm [resolvable:$true] %s40_s8 }
   0x4   :  { %s361_s9 = smov 256   ;;  %s362_s10 = smov 16  }
   0x5   :  { %27 = dma.hbm_to_vmem [thread:$0]  %s20_s26, 512, %s22_s28, [#allocation3], %s361_s9, %s361_s9, %s362_s10  }
   0x6   :  { %s363_s11 = smov [#allocation5]   ;;  %s364_s13 = smov 128  }
   0x7   :  { %s42_s12 = sshll.u32 %s363_s11, 4  ;;  %s365_s14 = smov 8   ;;  %s43_s12 = int_to_ptr.vmem [resolvable:$true] %s42_s12 }
   0x8   :  { %48 = dma.hbm_to_vmem [thread:$0]  %s41_s8, 1024, %s43_s12, [#allocation6], %s364_s13, %s364_s13, %s365_s14  }
   0x9   :  { %354 = dma.done.wait [#allocation3], 512  }
   0xa   :  { %355 = vsyncadd [#allocation3], 4294966784 }
   0xb   :  { %356 = dma.done.wait [#allocation6], 1024  }
   0xc   :  { %357 = vsyncadd [#allocation6], 4294966272  ;;  %v78_v0 = vld [vmem:[%s548_s1 + $0x78] sm:$0xff]  ;;  %v77_v1 = vld [vmem:[%s548_s1 + $0x70] sm:$0xff]  ;;  %vm97_vm0 = vcmask 1044480   ;;  %vm90_vm1 = vcmask 433152  }
   0xd   :  { %101 = vmatpush.msra.mxu0 %v78_v0  ;;  %v76_v2 = vld [vmem:[%s548_s1 + $0x68] sm:$0xff]  ;;  %v85_v3 = vld [vmem:[%s548_s1 + $0xb0] sm:$0x1f]  ;;  %v75_v4 = vld [vmem:[%s548_s1 + $0x60] sm:$0xff]  ;;  %vm194_vm2 = vcmask 523264   ;;  %vm225_vm3 = vcmask 1041409  }
   0xe   :  { %268 = vmatpush.msk.msra.mxu1 %vm97_vm0, %v85_v3  ;;  %v84_v5 = vld [vmem:[%s548_s1 + $0xa8] sm:$0xff]  ;;  %v83_v6 = vld [vmem:[%s548_s1 + $0xa0] sm:$0xff]  ;;  %v74_v7 = vld [vmem:[%s548_s1 + $0x58] sm:$0xff]  ;;  %s366_s18 = smov [#allocation7]   ;;  %s257_s22 = sshll.u32 %s554_s7, 4  ;;  %s258_s22 = int_to_ptr.hbm [resolvable:$true] %s257_s22 }
   0xf   :  { %102 = vmatpush.msra.mxu0 %v77_v1  ;;  %v82_v8 = vld [vmem:[%s548_s1 + $0x98] sm:$0xff]  ;;  %v73_v9 = vld [vmem:[%s548_s1 + $0x50] sm:$0xff]  ;;  %v72_v13 = vld [vmem:[%s548_s1 + $0x48] sm:$0xff]  ;;  %s255_s19 = sshll.u32 %s366_s18, 4  ;;  %s256_s19 = int_to_ptr.vmem [resolvable:$true] %s255_s19 }
  0x10   :  { %134 = vmatpush.msra.mxu1 %v84_v5  ;;  %v81_v10 = vld [vmem:[%s548_s1 + $0x90] sm:$0xff]  ;;  %v164_v11 = vld [vmem:[%s550_s3 + $0x78] sm:$0xff]  ;;  %v80_v14 = vld [vmem:[%s548_s1 + $0x88] sm:$0xff] }
  0x11   :  { %103 = vmatpush.msra.mxu0 %v76_v2  ;;  %v163_v12 = vld [vmem:[%s550_s3 + $0x70] sm:$0xff]  ;;  %169 = vmatpush.msra.mxu2 %v164_v11  ;;  %v162_v15 = vld [vmem:[%s550_s3 + $0x68] sm:$0xff]  ;;  %v71_v16 = vld [vmem:[%s548_s1 + $0x40] sm:$0xff] }
  0x12   :  { %135 = vmatpush.msra.mxu1 %v83_v6  ;;  %v79_v17 = vld [vmem:[%s548_s1 + $0x80] sm:$0xff]  ;;  %v70_v19 = vld [vmem:[%s548_s1 + $0x38] sm:$0xff]  ;;  %v60_v20 = vld [vmem:[#allocation2 + $0x8] sm:$0xff] }
  0x13   :  { %104 = vmatpush.msra.mxu0 %v75_v4  ;;  %170 = vmatpush.msra.mxu2 %v163_v12  ;;  %v161_v18 = vld [vmem:[%s550_s3 + $0x60] sm:$0xff]  ;;  %v160_v21 = vld [vmem:[%s550_s3 + $0x58] sm:$0xff]  ;;  %v69_v22 = vld [vmem:[%s548_s1 + $0x30] sm:$0xff] }
  0x14   :  { %136 = vmatpush.msra.mxu1 %v82_v8  ;;  %v159_v23 = vld [vmem:[%s550_s3 + $0x50] sm:$0xff]  ;;  %v68_v24 = vld [vmem:[%s548_s1 + $0x28] sm:$0xff]  ;;  %v67_v26 = vld [vmem:[%s548_s1 + $0x20] sm:$0xff] }
  0x15   :  { %105 = vmatpush.msra.mxu0 %v74_v7  ;;  %171 = vmatpush.msra.mxu2 %v162_v15  ;;  %v158_v25 = vld [vmem:[%s550_s3 + $0x48] sm:$0xff]  ;;  %v157_v27 = vld [vmem:[%s550_s3 + $0x40] sm:$0xff]  ;;  %v66_v28 = vld [vmem:[%s548_s1 + $0x18] sm:$0xff] }
  0x16   :  { %137 = vmatpush.msra.mxu1 %v81_v10  ;;  %v62_v29 = vld [vmem:[#allocation2 + $0x18] sm:$0xff]  ;;  %v65_v31 = vld [vmem:[%s548_s1 + $0x10] sm:$0xff]  ;;  %v64_v33 = vld [vmem:[%s548_s1 + $0x8] sm:$0xff] }
  0x17   :  { %106 = vmatpush.msra.mxu0 %v73_v9  ;;  %172 = vmatpush.msra.mxu2 %v161_v18  ;;  %v156_v30 = vld [vmem:[%s550_s3 + $0x38] sm:$0xff]  ;;  %v155_v32 = vld [vmem:[%s550_s3 + $0x30] sm:$0xff]  ;;  %v154_v34 = vld [vmem:[%s550_s3 + $0x28] sm:$0xff] }
  0x18   :  { %138 = vmatpush.msra.mxu1 %v80_v14  ;;  %v63_v35 = vld [vmem:[%s548_s1] sm:$0xff]  ;;  %v61_v38 = vld [vmem:[#allocation2 + $0x10] sm:$0xff]  ;;  %v152_v39 = vld [vmem:[%s550_s3 + $0x18] sm:$0xff] }
  0x19   :  { %107 = vmatpush.msra.mxu0 %v72_v13  ;;  %173 = vmatpush.msra.mxu2 %v160_v21  ;;  %v59_v36 = vld [vmem:[#allocation2] sm:$0xff]  ;;  %v151_v40 = vld [vmem:[%s550_s3 + $0x10] sm:$0xff]  ;;  %v150_v41 = vld [vmem:[%s550_s3 + $0x8] sm:$0xff] }
  0x1a   :  { %139 = vmatpush.msra.mxu1 %v79_v17  ;;  %v153_v37 = vld [vmem:[%s550_s3 + $0x20] sm:$0xff]  ;;  %v218_v54 = vld [vmem:[#allocation5 + $0x38] sm:$0xff]  ;;  %v217_v55 = vld [vmem:[#allocation5 + $0x30] sm:$0xff] }
  0x1b   :  { %108 = vmatpush.msra.mxu0 %v71_v16  ;;  %269 = vmatmul.msk.f32.vlgmr.msra.gmra.mxu1 %vm90_vm1, %v60_v20  ;;  %v149_v42 = vld [vmem:[%s550_s3] sm:$0xff]  ;;  %v216_v56 = vld [vmem:[#allocation5 + $0x28] sm:$0xff]  ;;  %v214_v58 = vld [vmem:[#allocation5 + $0x18] sm:$0xff] }
  0x1c   :  { %174 = vmatpush.msra.mxu2 %v159_v23  ;;  %v279_v43 = vld [vmem:[%s549_s2] ss:$0 sm:$0xff]  ;;  %237 = vmatpush.msra.mxu3 %v218_v54  ;;  %v213_v59 = vld [vmem:[#allocation5 + $0x10] sm:$0xff]  ;;  %v212_v60 = vld [vmem:[#allocation5 + $0x8] sm:$0xff] }
  0x1d   :  { %109 = vmatpush.msra.mxu0 %v70_v19  ;;  %v215_v57 = vld [vmem:[#allocation5 + $0x20] sm:$0xff] }
  0x1e   :  { %175 = vmatpush.msra.mxu2 %v158_v25  ;;  %238 = vmatpush.msra.mxu3 %v217_v55  ;;  %v211_v61 = vld [vmem:[#allocation5] sm:$0xff] }
  0x1f   :  { %110 = vmatpush.msra.mxu0 %v69_v22  ;;  %v280_v62 = vld [vmem:[%s551_s4] ss:$0 sm:$0xff] }
  0x20   :  { %176 = vmatpush.msra.mxu2 %v157_v27  ;;  %239 = vmatpush.msra.mxu3 %v216_v56  ;;  %v281_v22 = vld [vmem:[%s553_s6] ss:$0 sm:$0xff] }
  0x21   :  { %111 = vmatpush.msra.mxu0 %v68_v24 }
  0x22   :  { %177 = vmatpush.msra.mxu2 %v156_v30  ;;  %240 = vmatpush.msra.mxu3 %v215_v57 }
  0x23   :  { %112 = vmatpush.msra.mxu0 %v67_v26  ;;  %270 = vmatmul.msk.f32.gmra.mxu1 %vm90_vm1, %v62_v29 }
  0x24   :  { %178 = vmatpush.msra.mxu2 %v155_v32  ;;  %241 = vmatpush.msra.mxu3 %v214_v58 }
  0x25   :  { %113 = vmatpush.msra.mxu0 %v66_v28 }
  0x26   :  { %179 = vmatpush.msra.mxu2 %v154_v34  ;;  %242 = vmatpush.msra.mxu3 %v213_v59 }
  0x27   :  { %114 = vmatpush.msra.mxu0 %v65_v31 }
  0x28   :  { %180 = vmatpush.msra.mxu2 %v153_v37  ;;  %243 = vmatpush.msra.mxu3 %v212_v60 }
  0x29   :  { %115 = vmatpush.msra.mxu0 %v64_v33 }
  0x2a   :  { %181 = vmatpush.msra.mxu2 %v152_v39  ;;  %244 = vmatpush.msra.mxu3 %v211_v61 }
  0x2b   :  { %116 = vmatpush.msra.mxu0 %v63_v35 }
  0x2c   :  { %117 = vmatmul.f32.vlgmr.msra.gmra.mxu0 %v59_v36  ;;  %182 = vmatpush.msra.mxu2 %v151_v40 }
  0x2e   :  { %183 = vmatpush.msra.mxu2 %v150_v41 }
  0x30   :  { %184 = vmatpush.msra.mxu2 %v149_v42 }
  0x34   :  { %120 = vmatmul.f32.gmra.mxu0 %v61_v38 }
  0x98   :  { %v141_v44 = vpop.f32.mrf.mxu1 }
  0xa0   :  { %v144_v50 = vpop.f32.mrf.mxu1 }
  0xa9   :  { %v118_v45 = vpop.f32.mrf.mxu0 }
  0xaa   :  { %v119_v46 = vadd.f32 %v279_v43, %v118_v45 }
  0xac   :  { %v142_v47 = vadd.f32 %v141_v44, %v119_v46 }
  0xae   :  { %v147_v48 = vmax.f32 %v142_v47, 0.0 }
  0xb0   :  { %185 = vmatmul.f32.vlgmr.msra.gmra.mxu2 %v147_v48 }
  0xb1   :  { %v121_v49 = vpop.f32.mrf.mxu0 }
  0xb2   :  { %v122_v51 = vadd.f32 %v279_v43, %v121_v49 }
  0xb4   :  { %v145_v52 = vadd.f32 %v144_v50, %v122_v51 }
  0xb6   :  { %v148_v53 = vmax.f32 %v145_v52, 0.0 }
  0xb8   :  { %188 = vmatmul.f32.gmra.mxu2 %v148_v53 }
 0x133   :  { %v186_v63 = vpop.f32.mrf.mxu2 }
 0x134   :  { %v187_v0 = vadd.f32 %v280_v62, %v186_v63 }
 0x136   :  { %v192_v1 = vmax.f32 %v187_v0, 0.0 }
 0x138   :  { %v195_v2 = vsel %vm194_vm2, %v192_v1, 0.0 }
 0x139   :  { %v196_v3 = vrot.slane %v195_v2, 4 }
 0x13b   :  { %v189_v4 = vpop.f32.mrf.mxu2  ;;  %v197_v5 = vadd.f32 %v196_v3, %v195_v2 }
 0x13c   :  { %v190_v6 = vadd.f32 %v280_v62, %v189_v4 }
 0x13d   :  { %v198_v7 = vrot.slane %v197_v5, 2 }
 0x13e   :  { %v193_v8 = vmax.f32 %v190_v6, 0.0 }
 0x13f   :  { %v199_v10 = vadd.f32 %v198_v7, %v197_v5 }
 0x140   :  { %v202_v9 = vsel %vm194_vm2, %v193_v8, 0.0 }
 0x141   :  { %v203_v11 = vrot.slane %v202_v9, 4  ;;  %v200_v13 = vrot.slane %v199_v10, 1 }
 0x143   :  { %v204_v12 = vadd.f32 %v203_v11, %v202_v9  ;;  %v201_v16 = vadd.f32 %v200_v13, %v199_v10 }
 0x145   :  { %v205_v14 = vrot.slane %v204_v12, 2  ;;  %v209_v19 = vmul.f32 0.125, %v201_v16 }
 0x147   :  { %v206_v15 = vadd.f32 %v205_v14, %v204_v12 }
 0x149   :  { %v207_v17 = vrot.slane %v206_v15, 1 }
 0x14b   :  { %v208_v18 = vadd.f32 %v207_v17, %v206_v15 }
 0x14d   :  { %v210_v20 = vmul.f32 0.125, %v208_v18 }
 0x14f   :  { %v226_v21 = vsel %vm225_vm3, %v210_v20, %v209_v19 }
 0x150   :  { %271 = vmatmul.msk.f32.vlgmr.msra.gmra.mxu3 %vm194_vm2, %v226_v21 }
 0x1d3   :  { %v246_v23 = vpop.f32.mrf.mxu3 }
 0x1d4   :  { %v247_v24 = vadd.f32 %v281_v22, %v246_v23 }
 0x1d6   :  { %249 = vst [vmem:[#allocation7] sm:$0x3] %v247_v24 }
 0x1d7   :  { %260 = dma.vmem_to_hbm [thread:$0]  %s256_s19, 32, %s258_s22, [#allocation4]  }
 0x1d8   :  { %358 = dma.done.wait [#allocation4], 32  }
 0x1d9   :  { %359 = vsyncadd [#allocation4], 4294967264 }
 0x1da   :  { %265 = vsyncpa [#allocation3], 1 }
 0x1db   :  { %266 = vsyncpa [#allocation6], 1 }
 0x1dc   :  { %267 = vsyncpa [#allocation4], 1 }

</bundles_post_ra>
